<compile_context>
chip_gen: v7x
topology: tpu7x:2x2x1
jax: 0.10.0
libtpu: 0.0.40
codegen_flags: <defaults>
</compile_context>

<pallas_src>
import numpy as np

import jax
import jax.numpy as jnp
from jax import lax
from jax.experimental import pallas as pl
from jax.experimental.pallas import tpu as pltpu


def _round_up(x, m):
    return ((x + m - 1) // m) * m


# ------------------------------ Pallas kernel ------------------------------ #
def _gather_matmul_relu_kernel(idx_ref,   # SMEM (N_pad,) int32  (scalar prefetch)
                               feat_ref,  # VMEM (num_nodes, K)  resident concat table
                               w_ref,     # VMEM (K, E)          resident weight (pre-T)
                               o_ref,     # VMEM (tn, E) f32
                               x_ref):    # VMEM scratch (tn, K)
    tn = o_ref.shape[0]
    base = pl.program_id(0) * tn

    # In-kernel row gather: x[r, :] = feat_cat[idx[base + r], :]
    def gather_row(r, carry):
        node = idx_ref[base + r]
        x_ref[pl.ds(r, 1), :] = feat_ref[pl.ds(node, 1), :]
        return carry

    lax.fori_loop(0, tn, gather_row, 0)

    # Single fused matmul over K = 4*feat_dim, f32 accumulation, then relu.
    acc = jnp.dot(x_ref[...], w_ref[...], preferred_element_type=jnp.float32)
    o_ref[...] = jnp.maximum(acc, 0.0).astype(o_ref.dtype)


def uniform_combine(idx, feat_cat, weight_t, *, block_rows=1024):
    """relu(feat_cat[idx] @ weight_t), fused gather+matmul+relu in one kernel.

    idx      : (N,) int32 node indices
    feat_cat : (num_nodes, K) concatenated feature table (K = 4 * feat_dim)
    weight_t : (K, E) pre-transposed weight
    returns  : (N, E) float32
    """
    N = int(idx.shape[0])
    num_nodes, K = feat_cat.shape
    Kw, E = weight_t.shape
    assert K == Kw

    # Node-tile size: multiple of 16 sublanes, balanced over ceil(N/block_rows)
    # tiles so row padding stays < 16 rows per tile (no ~2x blow-up when N is
    # just above block_rows).
    if N <= block_rows:
        tn = _round_up(N, 16)
    else:
        ntiles = -(-N // block_rows)
        tn = _round_up(-(-N // ntiles), 16)
    grid_n = -(-N // tn)
    n_pad = grid_n * tn

    # Pad ONLY the index vector (dummy node 0); padded rows sliced off below.
    if n_pad != N:
        idx = jnp.pad(idx, (0, n_pad - N))

    # Explicit VMEM budget (keeps the kernel portable on v7x's 64 MiB VMEM).
    isz = jnp.dtype(feat_cat.dtype).itemsize

    def _pb(r, c, s):  # footprint padded to (8, 128) tiles
        return _round_up(r, 8) * _round_up(c, 128) * s

    needed = (2 * _pb(num_nodes, K, isz) + 2 * _pb(K, E, isz)
              + _pb(tn, K, isz) + 2 * _pb(tn, E, 4))
    vmem_limit = int(min(96 << 20, max(32 << 20, needed + (8 << 20))))

    out = pl.pallas_call(
        _gather_matmul_relu_kernel,
        out_shape=jax.ShapeDtypeStruct((n_pad, E), jnp.float32),
        grid_spec=pltpu.PrefetchScalarGridSpec(
            num_scalar_prefetch=1,
            grid=(grid_n,),
            in_specs=[
                pl.BlockSpec((num_nodes, K), lambda i, idx_ref: (0, 0)),  # table: VMEM resident
                pl.BlockSpec((K, E), lambda i, idx_ref: (0, 0)),          # weight: VMEM resident
            ],
            out_specs=pl.BlockSpec((tn, E), lambda i, idx_ref: (i, 0)),   # real E width
            scratch_shapes=[pltpu.VMEM((tn, K), feat_cat.dtype)],
        ),
        compiler_params=pltpu.CompilerParams(
            dimension_semantics=("parallel",),   # node tiles across TCs (v7x)
            vmem_limit_bytes=vmem_limit,
        ),
    )(idx, feat_cat, weight_t)
    return out[:N]


# ----------------------------- host-side module ----------------------------- #
def _xavier_uniform(key, shape):
    fan_out, fan_in = shape  # torch convention for 2D weights
    bound = float(np.sqrt(6.0 / (fan_in + fan_out)))
    return jax.random.uniform(key, shape, jnp.float32, -bound, bound)


class UniformCombinatorPallas:
    """JAX/Pallas port of the PyTorch UniformCombinator (forward only)."""

    def __init__(self, feat1, feat2, feat3, feat4, feat_dim, embed_dim, key,
                 dtype=jnp.float32, block_rows=1024):
        self.feat_dim = feat_dim
        self.embed_dim = embed_dim
        self.block_rows = block_rows
        # One-time static prep (hoisted out of forward):
        #  - concat the four tables (same index is used for all of them)
        #  - pre-transpose the weight.
        # dtype=jnp.bfloat16 halves table/weight HBM + VMEM traffic if the
        # consumer tolerates bf16 inputs; default f32 matches the spec exactly.
        self.feat_cat = jnp.concatenate(
            [feat1, feat2, feat3, feat4], axis=1).astype(dtype)           # (num_nodes, 4D)
        self.weight = _xavier_uniform(key, (embed_dim, feat_dim * 4))     # torch layout (E, 4D)
        self.weight_t = jnp.asarray(self.weight.T, dtype=dtype)           # (4D, E)

    def forward(self, nodes):
        idx = jnp.asarray(np.asarray(nodes, dtype=np.int32))
        return uniform_combine(idx, self.feat_cat, self.weight_t,
                               block_rows=self.block_rows)


# ----------------------------------- main ----------------------------------- #
if __name__ == "__main__":
    key = jax.random.PRNGKey(0)
    k1, k2, k3, k4, kw = jax.random.split(key, 5)

    num_nodes_total = 64
    feat_dim = 16
    embed_dim = 32

    feat1 = jax.random.normal(k1, (num_nodes_total, feat_dim), jnp.float32)
    feat2 = jax.random.normal(k2, (num_nodes_total, feat_dim), jnp.float32)
    feat3 = jax.random.normal(k3, (num_nodes_total, feat_dim), jnp.float32)
    feat4 = jax.random.normal(k4, (num_nodes_total, feat_dim), jnp.float32)

    def reference(nodes, weight):
        idx_np = np.asarray(nodes, dtype=np.int32)
        combined = np.concatenate(
            [np.asarray(feat1)[idx_np], np.asarray(feat2)[idx_np],
             np.asarray(feat3)[idx_np], np.asarray(feat4)[idx_np]], axis=1)
        return np.maximum(combined @ np.asarray(weight).T, 0.0)  # (N, E)

    # Case 1: small batch (N=8 -> one 16-row tile, index-padded only).
    comb = UniformCombinatorPallas(feat1, feat2, feat3, feat4,
                                   feat_dim, embed_dim, key=kw)
    nodes_a = [0, 3, 5, 7, 9, 11, 14, 19]
    out_a = jax.block_until_ready(comb.forward(nodes_a))
    assert out_a.shape == (len(nodes_a), embed_dim)
    np.testing.assert_allclose(np.asarray(out_a), reference(nodes_a, comb.weight),
                               rtol=2e-2, atol=2e-2)

    # Case 2: multi-tile grid (block_rows=16 -> 3 node tiles, ragged tail padded
    # via the index vector only).
    comb_tiled = UniformCombinatorPallas(feat1, feat2, feat3, feat4,
                                         feat_dim, embed_dim, key=kw,
                                         block_rows=16)
    nodes_b = [(7 * i + 3) % num_nodes_total for i in range(40)]
    out_b = jax.block_until_ready(comb_tiled.forward(nodes_b))
    assert out_b.shape == (len(nodes_b), embed_dim)
    np.testing.assert_allclose(np.asarray(out_b), reference(nodes_b, comb_tiled.weight),
                               rtol=2e-2, atol=2e-2)

    print("KERNEL_OK")
</pallas_src>

<mosaic_0001>
module attributes {stable_mosaic.version = 11 : i64} {
  func.func @_gather_matmul_relu_kernel(%arg0: i32, %arg1: memref<16xi32, #tpu.memory_space<smem>>, %arg2: memref<64x64xf32, #tpu.memory_space<vmem>>, %arg3: memref<64x32xf32, #tpu.memory_space<vmem>>, %arg4: memref<16x32xf32, #tpu.memory_space<vmem>>, %arg5: memref<16x64xf32, #tpu.memory_space<vmem>>) attributes {dimension_semantics = [#tpu.dimension_semantics<parallel>], iteration_bounds = array<i64: 1>, scalar_prefetch = 1 : i64, scratch_operands = 1 : i64, tpu.core_type = #tpu.core_type<tc>, window_params = [{pipeline_mode = #tpu.pipeline_mode<synchronous>, transform_indices = @transform_0, window_bounds = array<i64: 64, 64>}, {pipeline_mode = #tpu.pipeline_mode<synchronous>, transform_indices = @transform_1, window_bounds = array<i64: 64, 32>}, {transform_indices = @transform_2, window_bounds = array<i64: 16, 32>}]} {
    %c16_i32 = arith.constant 16 : i32
    %0 = arith.muli %arg0, %c16_i32 : i32
    %c0_i32 = arith.constant 0 : i32
    %c16_i32_0 = arith.constant 16 : i32
    %1 = arith.addi %c0_i32, %c16_i32_0 : i32
    %c1_i32 = arith.constant 1 : i32
    scf.for %arg6 = %c0_i32 to %1 step %c1_i32  : i32 {
      %8 = arith.addi %0, %arg6 : i32
      %9 = arith.index_cast %8 : i32 to index
      %10 = memref.load %arg1[%9] : memref<16xi32, #tpu.memory_space<smem>>
      %11 = arith.index_cast %10 : i32 to index
      %c0_8 = arith.constant 0 : index
      %12 = vector.load %arg2[%11, %c0_8] : memref<64x64xf32, #tpu.memory_space<vmem>>, vector<1x64xf32>
      %13 = arith.index_cast %arg6 : i32 to index
      %c0_9 = arith.constant 0 : index
      %14 = vector.load %arg5[%13, %c0_9] : memref<16x64xf32, #tpu.memory_space<vmem>>, vector<1x64xf32>
      tpu.vector_store %arg5[%13, %c0_9], %12 {strides = array<i32>} : memref<16x64xf32, #tpu.memory_space<vmem>>, vector<1x64xf32>,
    }
    %c16_i32_1 = arith.constant 16 : i32
    %c0 = arith.constant 0 : index
    %c0_2 = arith.constant 0 : index
    %2 = vector.load %arg5[%c0, %c0_2] : memref<16x64xf32, #tpu.memory_space<vmem>>, vector<16x64xf32>
    %c0_3 = arith.constant 0 : index
    %c0_4 = arith.constant 0 : index
    %3 = vector.load %arg3[%c0_3, %c0_4] : memref<64x32xf32, #tpu.memory_space<vmem>>, vector<64x32xf32>
    %cst = arith.constant dense<0.000000e+00> : vector<16x32xf32>
    %4 = tpu.matmul %2, %3, %cst {dimension_numbers = #tpu.dot_dimension_numbers<[1], [0], [0], [1], [0, 0, 1, 1], [], []>} : vector<16x64xf32>, vector<64x32xf32>, vector<16x32xf32> -> vector<16x32xf32>
    %cst_5 = arith.constant 0.000000e+00 : f32
    %5 = vector.broadcast %cst_5 : f32 to vector<16x32xf32>
    %6 = arith.maximumf %4, %5 : vector<16x32xf32>
    %c0_6 = arith.constant 0 : index
    %c0_7 = arith.constant 0 : index
    %7 = vector.load %arg4[%c0_6, %c0_7] : memref<16x32xf32, #tpu.memory_space<vmem>>, vector<16x32xf32>
    tpu.vector_store %arg4[%c0_6, %c0_7], %6 {strides = array<i32>} : memref<16x32xf32, #tpu.memory_space<vmem>>, vector<16x32xf32>,
    return
  }
  func.func @transform_0(%arg0: i32, %arg1: memref<16xi32, #tpu.memory_space<smem>>) -> (i32, i32) {
    %c0_i32 = arith.constant 0 : i32
    %c0_i32_0 = arith.constant 0 : i32
    %c0_i32_1 = arith.constant 0 : i32
    return %c0_i32, %c0_i32_0 : i32, i32
  }
  func.func @transform_1(%arg0: i32, %arg1: memref<16xi32, #tpu.memory_space<smem>>) -> (i32, i32) {
    %c0_i32 = arith.constant 0 : i32
    %c0_i32_0 = arith.constant 0 : i32
    %c0_i32_1 = arith.constant 0 : i32
    return %c0_i32, %c0_i32_0 : i32, i32
  }
  func.func @transform_2(%arg0: i32, %arg1: memref<16xi32, #tpu.memory_space<smem>>) -> (i32, i32) {
    %c0_i32 = arith.constant 0 : i32
    %c0_i32_0 = arith.constant 0 : i32
    return %arg0, %c0_i32 : i32, i32
  }
}

</mosaic_0001>

<bundles_post_ra>
// kernel: tpu_custom_call.1
= control target key start
LH: loop header
LB: loop body
LE: loop exit
PB: predicated region body
PF: predicated region fallthrough
CT: control target
= control target key end

     0   :  { %s326_s0 = inlined_call_operand.vmem [shape: s32[16], index: 0, kind: input, shape index: {}]   ;;  %s327_s1 = inlined_call_operand.vmem [shape: f32[64,64], index: 1, kind: input, shape index: {}]   ;;  %s328_s2 = inlined_call_operand.vmem [shape: f32[64,32], index: 2, kind: input, shape index: {}]   ;;  %s329_s3 = inlined_call_operand.hbm [shape: f32[16,32], index: 3, kind: output, shape index: {}]  }
   0x1   :  { %s8_s14 = sshll.u32 %s326_s0, 4  ;;  %s9_s14 = int_to_ptr.vmem [resolvable:$true] %s8_s14 }
   0x2   :  { %s212_s15 = scalar_lea.vmem %s9_s14, 16  ;;  %p217_p1 = scmp.lt.s32.totalorder %s9_s14, %s9_s14 }
   0x3   :  { %p213_p0 = scmp.ne.s32.totalorder %s9_s14, %s212_s15  ;;  %p218_p2 = scmp.lt.s32.totalorder %s212_s15, %s212_s15 }
   0x5   :  { %p219_p3 = por %p218_p2, %p217_p1 }
   0x7   :  { %p220_p4 = pnand %p219_p3, %p213_p0 }
   0x9   :  { %223 = shalt.err (!%p220_p4)  }
   0xa   :  { %s258_s16 = smov [#allocation4]  }
   0xb   :  { %11 = dma.vmem_to_smem %s9_s14, 16, %s258_s16, [#allocation3] }
   0xc   :  { %250 = dma.done.wait [#allocation3], 16 }
   0xd   :  { %251 = vsyncadd [#allocation3], 4294967280 }
   0xe   :  { %13 = sfence }
   0xf   :  { %14 = vsyncpa [#allocation6], 0  ;;  %s254_s17 = smov 0  }
  0x10 LB: > { %s27_s18 = sld [smem:[#allocation4 + %s256_s17]]  ;;  %vm31_vm0 = vcmask 516096   ;;  %s30_s21 = scalar_lea.vmem [#allocation2], %s256_s17  ;;  %s256_s17 = sphi %s254_s17, %s25_s17  }
  0x11   : > { %s25_s17 = sadd.s32 1, %s256_s17  }
  0x12   : > { %p22_p5 = scmp.ge.s32.totalorder %s25_s17, 16  }
  0x13   :  { %v35_v1 = vld [vmem:[%s328_s2] sm:$0xff] (%p22_p5)  ;;  %v36_v2 = vld [vmem:[%s328_s2 + $0x8] sm:$0xff] (%p22_p5)  ;;  %v37_v3 = vld [vmem:[%s328_s2 + $0x10] sm:$0xff] (%p22_p5)  ;;  %vm43_vm1 = vcmask (%p22_p5), 523264   ;;  %s259_s10 = smov (%p22_p5), [#allocation5]   ;;  %vm127_vm2 = vcmask (%p22_p5), 261120  }
  0x14   :  { %24 = sbr.rel (!%p22_p5) target bundleno = 16 (0x10), region = 37  ;;  %v184_v4 = vpack.c.bf16 (%p22_p5), %v36_v2, %v35_v1  ;;  %v38_v5 = vld [vmem:[%s328_s2 + $0x18] sm:$0xff] (%p22_p5)  ;;  %v39_v7 = vld [vmem:[%s328_s2 + $0x20] sm:$0xff] (%p22_p5)  ;;  %v40_v8 = vld [vmem:[%s328_s2 + $0x28] sm:$0xff] (%p22_p5)  ;;  %s135_s11 = sshll.u32 (%p22_p5), %s259_s10, 4  ;;  %s136_s11 = int_to_ptr.vmem [resolvable:$true] %s135_s11 }
  0x15   :  { %v188_v6 = vpack.c.bf16 (%p22_p5), %v38_v5, %v37_v3  ;;  %v192_v10 = vpack.c.bf16 (%p22_p5), %v40_v8, %v39_v7  ;;  %v41_v11 = vld [vmem:[%s328_s2 + $0x30] sm:$0xff] (%p22_p5)  ;;  %v42_v12 = vld [vmem:[%s328_s2 + $0x38] sm:$0xff] (%p22_p5)  ;;  %s224_s2 = scalar_lea.vmem (%p22_p5), %s136_s11, 256  ;;  %p229_p7 = scmp.lt.s32.totalorder (%p22_p5), %s136_s11, %s136_s11 }
  0x16   : > { %s28_s20 = scalar_lea.vmem %s327_s1, %s27_s18  ;;  %185 = vmatprep.subr.bf16.mxu0 (%p22_p5), %v184_v4  ;;  %v196_v13 = vpack.c.bf16 (%p22_p5), %v42_v12, %v41_v11  ;;  %p225_p6 = scmp.ne.s32.totalorder (%p22_p5), %s136_s11, %s224_s2 }
  0x17   : > { %v29_v0 = vld [vmem:[%s28_s20] sm:$0x1]  ;;  %187 = vmatpush3.bf16.msra.mxu0 (%p22_p5), %v184_v4  ;;  %p230_p8 = scmp.lt.s32.totalorder (%p22_p5), %s224_s2, %s224_s2 }
  0x18   : > { %32 = vst.msk [vmem:[%s30_s21] sm:$0x1] %vm31_vm0, %v29_v0  ;;  %189 = vmatprep.subr.bf16.mxu0 (%p22_p5), %v188_v6 }
  0x19   :  { %p231_p9 = por (%p22_p5), %p230_p8, %p229_p7 }
  0x1b   :  { %191 = vmatpush3.bf16.msra.mxu0 %v188_v6  ;;  %p232_p10 = pnand %p231_p9, %p225_p6 }
  0x1c   :  { %193 = vmatprep.subr.bf16.mxu0 %v192_v10 }
  0x1f   :  { %v33_v9 = vld [vmem:[#allocation2] sm:$0xff]  ;;  %195 = vmatpush3.bf16.msra.mxu0 %v192_v10  ;;  %v34_v14 = vld [vmem:[#allocation2 + $0x8] sm:$0xff] }
  0x20   :  { %181 = vmatprep.mubr.msk.f32.mxu0 %vm43_vm1, %v33_v9  ;;  %197 = vmatprep.subr.bf16.mxu0 %v196_v13 }
  0x23   :  { %199 = vmatpush3.bf16.msra.mxu0 %v196_v13 }
  0x26   :  { %182 = vmatmul.mubr.msk.f32.vlgmr.msra.gmra.mrb[0].mxu0 %vm43_vm1, %v34_v14 }
  0xf9   :  { %v183_v15 = vpop.f32.mrb[0].mxu0 }
  0xfa   :  { %v126_v16 = vmax.f32 %v183_v15, 0.0  ;;  %v116_v17 = vpop.f32.mrb[1].mxu0 }
  0xfb   :  { %v125_v18 = vmax.f32 %v116_v17, 0.0 }
  0xfc   :  { %129 = vst.msk [vmem:[#allocation5 + $0x8] sm:$0xff] %vm127_vm2, %v126_v16 }
  0xfd   :  { %128 = vst.msk [vmem:[#allocation5] sm:$0xff] %vm127_vm2, %v125_v18 }
  0xfe   :  { %235 = shalt.err (!%p232_p10)
}
  0xff   :  { %s236_s14 = scalar_lea.hbm %s329_s3, 256 }
 0x100   :  { %p237_p11 = scmp.ne.s32.totalorder %s329_s3, %s236_s14  ;;  %p240_p12 = scmp.lt.u32.totalorder %s236_s14, %s329_s3 }
 0x102   :  { %p242_p13 = pnand %p240_p12, %p237_p11 }
 0x104   :  { %245 = shalt.err (!%p242_p13)
}
 0x105   :  { %s260_s0 = smov 128   ;;  %s261_s19 = smov 8  }
 0x106   :  { %141 = dma.vmem_to_hbm [thread:$0]  %s136_s11, 256, %s329_s3, [#allocation6], %s260_s0, %s260_s0, %s261_s19  }
 0x107   :  { %252 = dma.done.wait [#allocation6], 256  }
 0x108   :  { %253 = vsyncadd [#allocation6], 4294967040 }
 0x109   :  { %145 = vsyncpa [#allocation6], 1 }

</bundles_post_ra>
